<compile_context>
chip_gen: v7x
topology: tpu7x:2x2x1
jax: 0.10.0
libtpu: 0.0.40
codegen_flags: <defaults>
</compile_context>

<pallas_src>
import jax
import jax.numpy as jnp
from jax.experimental import pallas as pl
from jax.experimental.pallas import tpu as pltpu


def attn_readout_kernel(nn_ref,    # [TB, 1]  int32 valid node counts
                        feat_ref,  # [TB, S, D]  raw (un-normalized) features
                        wuv_ref,   # [D, 2H]  BN-folded [Wu | Wv]
                        buv_ref,   # [1, 2H]  bias [shift@Wu | bv + shift@Wv]
                        we_ref,    # [1, H]   fc_e weight as a row
                        wo_ref,    # [D, O]   BN-folded fc_out weight
                        bo_ref,    # [1, O]   shift@Wo
                        out_ref):  # [TB, O]
    TB, S, D = feat_ref.shape
    H = we_ref.shape[1]

    feat = feat_ref[...]                                    # [TB, S, D] native
    n = nn_ref[...]                                         # [TB, 1] int32

    # Last-node one-hot on the sublane axis (for the fc_v gather).
    row3 = jax.lax.broadcasted_iota(jnp.int32, (TB, S, 1), 1)
    last = (row3 == (n.reshape(TB, 1, 1) - 1)).astype(jnp.float32)

    # Fused (BN-folded) fc_u / fc_v on all TB*S node rows at once (MXU).
    uv = jnp.dot(feat.reshape(TB * S, D), wuv_ref[...],
                 preferred_element_type=jnp.float32)        # [TB*S, 2H]
    uv = (uv + buv_ref[...]).reshape(TB, S, 2 * H)

    u = uv[:, :, :H]                                        # [TB, S, H]
    # Gather each graph's last-node v half via a one-hot sublane reduce.
    v = jnp.sum(uv[:, :, H:] * last, axis=1, keepdims=True)  # [TB, 1, H]

    # fc_e (single output column) as VPU multiply + lane reduce; the result
    # lives on a squeezed [TB, S] layout for the whole softmax path.
    e = jnp.sum(jax.nn.sigmoid(u + v) * we_ref[...].reshape(1, 1, H),
                axis=-1)                                    # [TB, S]

    # segment_softmax over each graph's valid nodes, on [TB, S].
    row2 = jax.lax.broadcasted_iota(jnp.int32, (TB, S), 1)
    valid = row2 < n                                        # [TB, S] bool
    e_m = jnp.where(valid, e, jnp.float32(-1e30))
    m = jnp.max(e_m, axis=-1, keepdims=True)                # [TB, 1]
    p = jnp.exp(e_m - m) * valid.astype(jnp.float32)        # [TB, S]
    denom = jnp.sum(p, axis=-1, keepdims=True)              # [TB, 1]
    # Exact reciprocal on a tiny [TB, 1] tensor (essentially free) keeps
    # sum(alpha) == 1 exactly, as the BN-shift folding through Wo assumes.
    # Clamp so padding graphs (num_nodes == 0) give alpha = 0, not NaN.
    alpha = p / jnp.maximum(denom, jnp.float32(1e-30))      # [TB, S]

    # segment_reduce('sum') of feat * alpha, then BN-folded fc_out (+ bias).
    rst = jnp.sum(feat.astype(jnp.float32) * alpha[:, :, None], axis=1)  # [TB,D]
    out_ref[...] = (jnp.dot(rst, wo_ref[...].astype(jnp.float32),
                            preferred_element_type=jnp.float32)
                    + bo_ref[...])                          # [TB, O]


def attn_readout(feat, num_nodes, params, *, tb=None, feat_dtype=jnp.float32):
    """feat: [B, S, D] f32 (zero-padded), num_nodes: [B] int32 -> [B, O].

    feat_dtype=jnp.bfloat16 optionally halves HBM read traffic (feat and the
    folded weights are shipped in bf16; all math stays f32).
    """
    B, S, D = feat.shape
    H = params["wu"].shape[1]
    O = params["wo"].shape[1]

    # Fold BatchNorm (eval-mode running stats + affine) into the weights.
    eps = 1e-5
    scale = params["gamma"] / jnp.sqrt(params["running_var"] + eps)   # [D]
    shift = params["beta"] - params["running_mean"] * scale           # [D]

    wu_s = scale[:, None] * params["wu"]                              # [D, H]
    wv_s = scale[:, None] * params["wv"]                              # [D, H]
    wo_s = scale[:, None] * params["wo"]                              # [D, O]
    bu = shift @ params["wu"]                                         # [H]
    bv = params["bv"] + shift @ params["wv"]                          # [H]
    bo = shift @ params["wo"]                                         # [O]

    w_uv = jnp.concatenate([wu_s, wv_s], axis=1).astype(feat_dtype)   # [D, 2H]
    b_uv = jnp.concatenate([bu, bv], axis=0).reshape(1, 2 * H).astype(jnp.float32)
    we_row = params["we"].reshape(1, H).astype(jnp.float32)
    wo_c = wo_s.astype(feat_dtype)
    bo_row = bo.reshape(1, O).astype(jnp.float32)

    feat_c = feat.astype(feat_dtype)
    itemsize = jnp.dtype(feat_dtype).itemsize

    # --- Tile size: size the feat block by DMA bytes (HBM-BW-bound kernel) ---
    # Target ~1 MiB of logical feat per grid step (~85% of HBM roofline regime
    # and amortizes the ~0.35 us/step fixed cost); cap at round_up(B, 8) so a
    # small batch isn't padded to a huge block, and keep >= 2 grid steps when
    # B is moderate so v7x can shard graphs across both TensorCores.
    b_up = -(-B // 8) * 8
    if tb is None:
        per_graph = S * D * itemsize
        target = 1 << 20
        tb = max(8, -(-target // per_graph))
        tb = min(tb, 2048)            # v7x VMEM ceiling given ~4x lane padding
        tb = min(tb, b_up)
        if b_up >= 16:
            tb = min(tb, max(8, (b_up // 2) // 8 * 8))
    tb = max(8, -(-int(tb) // 8) * 8)
    b_pad = -(-B // tb) * tb

    # --- Explicit VMEM budget: D=32 / 2H=32 blocks are lane-padded to 128 ---
    lane = 128
    pd = -(-D // lane) * lane
    p2h = -(-(2 * H) // lane) * lane
    feat_block = tb * S * pd * itemsize          # one feat buffer (padded)
    uv_block = tb * S * p2h * 4                  # one [TB,S,2H]-class f32 temp
    est = int((2 * feat_block + 4 * uv_block) * 1.25) + (2 << 20)
    vmem_limit = int(min(max(est, 16 << 20), 48 << 20))   # fits v7x 64 MiB/TC

    feat_p = jnp.pad(feat_c, ((0, b_pad - B), (0, 0), (0, 0)))
    nn_p = jnp.pad(num_nodes.astype(jnp.int32),
                   (0, b_pad - B)).reshape(b_pad, 1)

    # Note: output spec intentionally stays (tb, O) — padding O to 128 lanes
    # would add ~40-50% HBM write bytes to a memory-bound kernel (net loss).
    out = pl.pallas_call(
        attn_readout_kernel,
        out_shape=jax.ShapeDtypeStruct((b_pad, O), jnp.float32),
        grid=(b_pad // tb,),
        in_specs=[
            pl.BlockSpec((tb, 1), lambda b: (b, 0)),        # num_nodes
            pl.BlockSpec((tb, S, D), lambda b: (b, 0, 0)),  # feat (TB graphs)
            pl.BlockSpec((D, 2 * H), lambda b: (0, 0)),     # W_uv (folded)
            pl.BlockSpec((1, 2 * H), lambda b: (0, 0)),     # b_uv
            pl.BlockSpec((1, H), lambda b: (0, 0)),         # We row
            pl.BlockSpec((D, O), lambda b: (0, 0)),         # Wo (folded)
            pl.BlockSpec((1, O), lambda b: (0, 0)),         # bo
        ],
        out_specs=pl.BlockSpec((tb, O), lambda b: (b, 0)),
        compiler_params=pltpu.CompilerParams(
            dimension_semantics=("parallel",),               # v7x: 2 TCs
            vmem_limit_bytes=vmem_limit),
    )(nn_p, feat_p, w_uv, b_uv, we_row, wo_c, bo_row)
    return out[:B]


def attn_readout_ref(feat, num_nodes, params):
    """Pure-JAX reference of the PyTorch forward (eval-mode BN)."""
    B, S, D = feat.shape
    eps = 1e-5
    scale = params["gamma"] / jnp.sqrt(params["running_var"] + eps)
    shift = params["beta"] - params["running_mean"] * scale
    feat_bn = feat * scale + shift
    mask = jnp.arange(S)[None, :] < num_nodes[:, None]                 # [B, S]
    u = feat_bn @ params["wu"]                                         # [B,S,H]
    feat_last = feat_bn[jnp.arange(B), num_nodes - 1]                  # [B, D]
    v = feat_last @ params["wv"] + params["bv"]                        # [B, H]
    e = (jax.nn.sigmoid(u + v[:, None, :]) @ params["we"])[..., 0]     # [B, S]
    e = jnp.where(mask, e, -jnp.inf)
    alpha = jax.nn.softmax(e, axis=1)                                  # [B, S]
    rst = jnp.einsum("bs,bsd->bd", alpha, feat_bn)                     # [B, D]
    return rst @ params["wo"]


if __name__ == "__main__":
    B, S, D, H, O = 2, 8, 32, 16, 24   # graphs, max nodes, input, hidden, output

    key = jax.random.PRNGKey(0)
    ks = jax.random.split(key, 12)

    feat = jax.random.normal(ks[0], (B, S, D), jnp.float32)
    num_nodes = jnp.array([8, 5], jnp.int32)            # graph 1 has padded rows
    node_mask = (jnp.arange(S)[None, :] < num_nodes[:, None]).astype(jnp.float32)
    feat = feat * node_mask[:, :, None]                 # zero the padded rows

    params = dict(
        gamma=1.0 + 0.1 * jax.random.normal(ks[1], (D,), jnp.float32),
        beta=0.1 * jax.random.normal(ks[2], (D,), jnp.float32),
        running_mean=0.1 * jax.random.normal(ks[3], (D,), jnp.float32),
        running_var=jax.random.uniform(ks[4], (D,), jnp.float32, 0.5, 1.5),
        wu=jax.random.normal(ks[5], (D, H), jnp.float32) / jnp.sqrt(D),
        wv=jax.random.normal(ks[6], (D, H), jnp.float32) / jnp.sqrt(D),
        bv=0.01 * jax.random.normal(ks[7], (H,), jnp.float32),
        we=jax.random.normal(ks[8], (H, 1), jnp.float32) / jnp.sqrt(H),
        wo=jax.random.normal(ks[9], (D, O), jnp.float32) / jnp.sqrt(D),
    )

    # Small-batch case (single grid step).
    out = attn_readout(feat, num_nodes, params)
    jax.block_until_ready(out)
    assert out.shape == (B, O)
    ref = attn_readout_ref(feat, num_nodes, params)
    assert jnp.allclose(out, ref, atol=1e-2, rtol=1e-2), (out, ref)

    # Moderate-batch case: exercises multi-step grid, tb clamping and padded
    # (num_nodes == 0) graphs introduced by round-up to tb.
    B2 = 40
    feat2 = jax.random.normal(ks[10], (B2, S, D), jnp.float32)
    num_nodes2 = jax.random.randint(ks[11], (B2,), 1, S + 1).astype(jnp.int32)
    mask2 = (jnp.arange(S)[None, :] < num_nodes2[:, None]).astype(jnp.float32)
    feat2 = feat2 * mask2[:, :, None]

    out2 = attn_readout(feat2, num_nodes2, params)
    jax.block_until_ready(out2)
    assert out2.shape == (B2, O)
    ref2 = attn_readout_ref(feat2, num_nodes2, params)
    assert jnp.allclose(out2, ref2, atol=1e-2, rtol=1e-2), (out2, ref2)

    print("KERNEL_OK")
</pallas_src>

<mosaic_0001>
module attributes {stable_mosaic.version = 11 : i64} {
  func.func @attn_readout_kernel(%arg0: i32, %arg1: memref<8x1xi32, #tpu.memory_space<vmem>>, %arg2: memref<8x8x32xf32, #tpu.memory_space<vmem>>, %arg3: memref<32x32xf32, #tpu.memory_space<vmem>>, %arg4: memref<1x32xf32, #tpu.memory_space<vmem>>, %arg5: memref<1x16xf32, #tpu.memory_space<vmem>>, %arg6: memref<32x24xf32, #tpu.memory_space<vmem>>, %arg7: memref<1x24xf32, #tpu.memory_space<vmem>>, %arg8: memref<8x24xf32, #tpu.memory_space<vmem>>) attributes {dimension_semantics = [#tpu.dimension_semantics<parallel>], iteration_bounds = array<i64: 1>, scalar_prefetch = 0 : i64, scratch_operands = 0 : i64, tpu.core_type = #tpu.core_type<tc>, window_params = [{transform_indices = @transform_0, window_bounds = array<i64: 8, 1>}, {transform_indices = @transform_1, window_bounds = array<i64: 8, 8, 32>}, {pipeline_mode = #tpu.pipeline_mode<synchronous>, transform_indices = @transform_2, window_bounds = array<i64: 32, 32>}, {pipeline_mode = #tpu.pipeline_mode<synchronous>, transform_indices = @transform_3, window_bounds = array<i64: 1, 32>}, {pipeline_mode = #tpu.pipeline_mode<synchronous>, transform_indices = @transform_4, window_bounds = array<i64: 1, 16>}, {pipeline_mode = #tpu.pipeline_mode<synchronous>, transform_indices = @transform_5, window_bounds = array<i64: 32, 24>}, {pipeline_mode = #tpu.pipeline_mode<synchronous>, transform_indices = @transform_6, window_bounds = array<i64: 1, 24>}, {transform_indices = @transform_7, window_bounds = array<i64: 8, 24>}]} {
    %c0 = arith.constant 0 : index
    %c0_0 = arith.constant 0 : index
    %c0_1 = arith.constant 0 : index
    %0 = vector.load %arg2[%c0, %c0_0, %c0_1] : memref<8x8x32xf32, #tpu.memory_space<vmem>>, vector<8x8x32xf32>
    %c0_2 = arith.constant 0 : index
    %c0_3 = arith.constant 0 : index
    %1 = vector.load %arg1[%c0_2, %c0_3] : memref<8x1xi32, #tpu.memory_space<vmem>>, vector<8x1xi32>
    %2 = tpu.iota {dimensions = array<i32: 1>} : vector<8x8x1xi32>
    %3 = vector.shape_cast %1 : vector<8x1xi32> to vector<8x1x1xi32>
    %c1_i32 = arith.constant 1 : i32
    %4 = vector.broadcast %c1_i32 : i32 to vector<8x1x1xi32>
    %5 = arith.subi %3, %4 : vector<8x1x1xi32>
    %6 = vector.broadcast %5 : vector<8x1x1xi32> to vector<8x8x1xi32>
    %7 = arith.cmpi eq, %2, %6 : vector<8x8x1xi32>
    %8 = arith.extui %7 : vector<8x8x1xi1> to vector<8x8x1xi32>
    %9 = arith.sitofp %8 : vector<8x8x1xi32> to vector<8x8x1xf32>
    %10 = vector.shape_cast %0 : vector<8x8x32xf32> to vector<64x32xf32>
    %c0_4 = arith.constant 0 : index
    %c0_5 = arith.constant 0 : index
    %11 = vector.load %arg3[%c0_4, %c0_5] : memref<32x32xf32, #tpu.memory_space<vmem>>, vector<32x32xf32>
    %cst = arith.constant dense<0.000000e+00> : vector<64x32xf32>
    %12 = tpu.matmul %10, %11, %cst {dimension_numbers = #tpu.dot_dimension_numbers<[1], [0], [0], [1], [0, 0, 1, 1], [], []>} : vector<64x32xf32>, vector<32x32xf32>, vector<64x32xf32> -> vector<64x32xf32>
    %c0_6 = arith.constant 0 : index
    %c0_7 = arith.constant 0 : index
    %13 = vector.load %arg4[%c0_6, %c0_7] : memref<1x32xf32, #tpu.memory_space<vmem>>, vector<1x32xf32>
    %14 = vector.broadcast %13 : vector<1x32xf32> to vector<64x32xf32>
    %15 = arith.addf %12, %14 : vector<64x32xf32>
    %16 = vector.shape_cast %15 : vector<64x32xf32> to vector<8x8x32xf32>
    %17 = vector.extract_strided_slice %16 {offsets = [0, 0, 0], sizes = [8, 8, 16], strides = [1, 1, 1]} : vector<8x8x32xf32> to vector<8x8x16xf32>
    %18 = vector.extract_strided_slice %16 {offsets = [0, 0, 16], sizes = [8, 8, 16], strides = [1, 1, 1]} : vector<8x8x32xf32> to vector<8x8x16xf32>
    %19 = vector.broadcast %9 : vector<8x8x1xf32> to vector<8x8x16xf32>
    %20 = arith.mulf %18, %19 : vector<8x8x16xf32>
    %cst_8 = arith.constant dense<0.000000e+00> : vector<8x16xf32>
    %21 = vector.multi_reduction <add>, %20, %cst_8 [1] : vector<8x8x16xf32> to vector<8x16xf32>
    %22 = vector.shape_cast %21 : vector<8x16xf32> to vector<8x1x16xf32>
    %23 = vector.broadcast %22 : vector<8x1x16xf32> to vector<8x8x16xf32>
    %24 = arith.addf %17, %23 : vector<8x8x16xf32>
    %25 = arith.negf %24 : vector<8x8x16xf32>
    %26 = math.exp %25 : vector<8x8x16xf32>
    %cst_9 = arith.constant 1.000000e+00 : f32
    %27 = vector.broadcast %cst_9 : f32 to vector<8x8x16xf32>
    %28 = arith.addf %27, %26 : vector<8x8x16xf32>
    %29 = arith.divf %27, %28 : vector<8x8x16xf32>
    %c0_10 = arith.constant 0 : index
    %c0_11 = arith.constant 0 : index
    %30 = vector.load %arg5[%c0_10, %c0_11] : memref<1x16xf32, #tpu.memory_space<vmem>>, vector<1x16xf32>
    %31 = vector.shape_cast %30 : vector<1x16xf32> to vector<1x1x16xf32>
    %32 = vector.broadcast %31 : vector<1x1x16xf32> to vector<8x8x16xf32>
    %33 = arith.mulf %29, %32 : vector<8x8x16xf32>
    %cst_12 = arith.constant dense<0.000000e+00> : vector<8x8xf32>
    %34 = vector.multi_reduction <add>, %33, %cst_12 [2] : vector<8x8x16xf32> to vector<8x8xf32>
    %35 = tpu.iota {dimensions = array<i32: 1>} : vector<8x8xi32>
    %36 = vector.broadcast %1 : vector<8x1xi32> to vector<8x8xi32>
    %37 = arith.cmpi slt, %35, %36 : vector<8x8xi32>
    %cst_13 = arith.constant -1.000000e+30 : f32
    %38 = vector.broadcast %cst_13 : f32 to vector<8x8xf32>
    %39 = arith.select %37, %34, %38 : vector<8x8xi1>, vector<8x8xf32>
    %cst_14 = arith.constant dense<0xFF800000> : vector<8xf32>
    %40 = vector.multi_reduction <maximumf>, %39, %cst_14 [1] : vector<8x8xf32> to vector<8xf32>
    %41 = vector.shape_cast %40 : vector<8xf32> to vector<8x1xf32>
    %42 = vector.broadcast %41 : vector<8x1xf32> to vector<8x8xf32>
    %43 = arith.subf %39, %42 : vector<8x8xf32>
    %44 = math.exp %43 : vector<8x8xf32>
    %45 = arith.extui %37 : vector<8x8xi1> to vector<8x8xi32>
    %46 = arith.sitofp %45 : vector<8x8xi32> to vector<8x8xf32>
    %47 = arith.mulf %44, %46 : vector<8x8xf32>
    %cst_15 = arith.constant dense<0.000000e+00> : vector<8xf32>
    %48 = vector.multi_reduction <add>, %47, %cst_15 [1] : vector<8x8xf32> to vector<8xf32>
    %49 = vector.shape_cast %48 : vector<8xf32> to vector<8x1xf32>
    %cst_16 = arith.constant 1.000000e-30 : f32
    %50 = vector.broadcast %cst_16 : f32 to vector<8x1xf32>
    %51 = arith.maximumf %49, %50 : vector<8x1xf32>
    %52 = vector.broadcast %51 : vector<8x1xf32> to vector<8x8xf32>
    %53 = arith.divf %47, %52 : vector<8x8xf32>
    %54 = vector.shape_cast %53 : vector<8x8xf32> to vector<8x8x1xf32>
    %55 = vector.broadcast %54 : vector<8x8x1xf32> to vector<8x8x32xf32>
    %56 = arith.mulf %0, %55 : vector<8x8x32xf32>
    %cst_17 = arith.constant dense<0.000000e+00> : vector<8x32xf32>
    %57 = vector.multi_reduction <add>, %56, %cst_17 [1] : vector<8x8x32xf32> to vector<8x32xf32>
    %c0_18 = arith.constant 0 : index
    %c0_19 = arith.constant 0 : index
    %58 = vector.load %arg6[%c0_18, %c0_19] : memref<32x24xf32, #tpu.memory_space<vmem>>, vector<32x24xf32>
    %cst_20 = arith.constant dense<0.000000e+00> : vector<8x24xf32>
    %59 = tpu.matmul %57, %58, %cst_20 {dimension_numbers = #tpu.dot_dimension_numbers<[1], [0], [0], [1], [0, 0, 1, 1], [], []>} : vector<8x32xf32>, vector<32x24xf32>, vector<8x24xf32> -> vector<8x24xf32>
    %c0_21 = arith.constant 0 : index
    %c0_22 = arith.constant 0 : index
    %60 = vector.load %arg7[%c0_21, %c0_22] : memref<1x24xf32, #tpu.memory_space<vmem>>, vector<1x24xf32>
    %61 = vector.broadcast %60 : vector<1x24xf32> to vector<8x24xf32>
    %62 = arith.addf %59, %61 : vector<8x24xf32>
    %c0_23 = arith.constant 0 : index
    %c0_24 = arith.constant 0 : index
    %63 = vector.load %arg8[%c0_23, %c0_24] : memref<8x24xf32, #tpu.memory_space<vmem>>, vector<8x24xf32>
    tpu.vector_store %arg8[%c0_23, %c0_24], %62 {strides = array<i32>} : memref<8x24xf32, #tpu.memory_space<vmem>>, vector<8x24xf32>,
    return
  }
  func.func @transform_0(%arg0: i32) -> (i32, i32) {
    %c0_i32 = arith.constant 0 : i32
    %c0_i32_0 = arith.constant 0 : i32
    return %arg0, %c0_i32 : i32, i32
  }
  func.func @transform_1(%arg0: i32) -> (i32, i32, i32) {
    %c0_i32 = arith.constant 0 : i32
    %c0_i32_0 = arith.constant 0 : i32
    %c0_i32_1 = arith.constant 0 : i32
    return %arg0, %c0_i32, %c0_i32_0 : i32, i32, i32
  }
  func.func @transform_2(%arg0: i32) -> (i32, i32) {
    %c0_i32 = arith.constant 0 : i32
    %c0_i32_0 = arith.constant 0 : i32
    %c0_i32_1 = arith.constant 0 : i32
    return %c0_i32, %c0_i32_0 : i32, i32
  }
  func.func @transform_3(%arg0: i32) -> (i32, i32) {
    %c0_i32 = arith.constant 0 : i32
    %c0_i32_0 = arith.constant 0 : i32
    %c0_i32_1 = arith.constant 0 : i32
    return %c0_i32, %c0_i32_0 : i32, i32
  }
  func.func @transform_4(%arg0: i32) -> (i32, i32) {
    %c0_i32 = arith.constant 0 : i32
    %c0_i32_0 = arith.constant 0 : i32
    %c0_i32_1 = arith.constant 0 : i32
    return %c0_i32, %c0_i32_0 : i32, i32
  }
  func.func @transform_5(%arg0: i32) -> (i32, i32) {
    %c0_i32 = arith.constant 0 : i32
    %c0_i32_0 = arith.constant 0 : i32
    %c0_i32_1 = arith.constant 0 : i32
    return %c0_i32, %c0_i32_0 : i32, i32
  }
  func.func @transform_6(%arg0: i32) -> (i32, i32) {
    %c0_i32 = arith.constant 0 : i32
    %c0_i32_0 = arith.constant 0 : i32
    %c0_i32_1 = arith.constant 0 : i32
    return %c0_i32, %c0_i32_0 : i32, i32
  }
  func.func @transform_7(%arg0: i32) -> (i32, i32) {
    %c0_i32 = arith.constant 0 : i32
    %c0_i32_0 = arith.constant 0 : i32
    return %arg0, %c0_i32 : i32, i32
  }
}

</mosaic_0001>

<bundles_post_ra>
// kernel: tpu_custom_call.1
= control target key start
LH: loop header
LB: loop body
LE: loop exit
PB: predicated region body
PF: predicated region fallthrough
CT: control target
= control target key end

     0   :  { %12 = vsyncpa [#allocation3], 0  ;;  %s1350_s0 = inlined_call_operand.vmem [shape: s32[8,1], index: 0, kind: input, shape index: {}]   ;;  %s1351_s1 = inlined_call_operand.vmem [shape: f32[8,8,32], index: 1, kind: input, shape index: {}]   ;;  %s1352_s2 = inlined_call_operand.hbm [shape: f32[32,32], index: 2, kind: input, shape index: {}]   ;;  %s1353_s3 = inlined_call_operand.vmem [shape: f32[1,32], index: 3, kind: input, shape index: {}]   ;;  %s1354_s4 = inlined_call_operand.vmem [shape: f32[1,16], index: 4, kind: input, shape index: {}]   ;;  %s1355_s5 = inlined_call_operand.vmem [shape: f32[32,24], index: 5, kind: input, shape index: {}]   ;;  %s1356_s6 = inlined_call_operand.vmem [shape: f32[1,24], index: 6, kind: input, shape index: {}]   ;;  %s1357_s7 = inlined_call_operand.hbm [shape: f32[8,24], index: 7, kind: output, shape index: {}]  }
   0x1   :  { %13 = vsyncpa [#allocation4], 0  ;;  %s1068_s24 = smov [#allocation2]   ;;  %s1020_s28 = scalar_lea.hbm %s1352_s2, 512 }
   0x2   :  { %s23_s25 = sshll.u32 %s1068_s24, 4  ;;  %p1021_p0 = scmp.ne.s32.totalorder %s1352_s2, %s1020_s28  ;;  %s24_s25 = int_to_ptr.vmem [resolvable:$true] %s23_s25 }
   0x3   :  { %p1024_p1 = scmp.lt.u32.totalorder %s1020_s28, %s1352_s2 }
   0x5   :  { %p1026_p2 = pnand %p1024_p1, %p1021_p0 }
   0x7   :  { %1029 = shalt.err (!%p1026_p2)
}
   0x8   :  { %s1030_s10 = scalar_lea.vmem %s24_s25, 512  ;;  %p1035_p4 = scmp.lt.s32.totalorder %s24_s25, %s24_s25 }
   0x9   :  { %p1031_p3 = scmp.ne.s32.totalorder %s24_s25, %s1030_s10  ;;  %p1036_p5 = scmp.lt.s32.totalorder %s1030_s10, %s1030_s10 }
   0xb   :  { %p1037_p6 = por %p1036_p5, %p1035_p4 }
   0xd   :  { %p1038_p7 = pnand %p1037_p6, %p1031_p3 }
   0xf   :  { %1041 = shalt.err (!%p1038_p7)
}
  0x10   :  { %s1069_s11 = smov 128   ;;  %s1070_s12 = smov 8  }
  0x11   :  { %29 = dma.hbm_to_vmem [thread:$0]  %s1352_s2, 512, %s24_s25, [#allocation3], %s1069_s11, %s1069_s11, %s1070_s12  }
  0x12   :  { %1064 = dma.done.wait [#allocation3], 512  }
  0x13   :  { %1065 = vsyncadd [#allocation3], 4294966784  ;;  %v50_v0 = vlaneseq  ;;  %v1071_v1 = vmov 0   ;;  %v1072_v2 = vmov 1966171168   ;;  %vm176_vm0 = vcmask 261120  }
  0x14   :  { %961 = vset.pattern.permute.xlu0 %v1071_v1  ;;  %v54_v3 = vunpack.c.l.s4 %v1072_v2  ;;  %972 = vset.pattern.permute.xlu1 %v1071_v1  ;;  %v165_v6 = vld [vmem:[#allocation2] sm:$0xff]  ;;  %v166_v7 = vld [vmem:[#allocation2 + $0x8] sm:$0xff]  ;;  %v167_v8 = vld [vmem:[#allocation2 + $0x10] sm:$0xff]  ;;  %v1073_v40 = vmov 0.0   ;;  %vm354_vm9 = vcmask 261248   ;;  %vm514_vm10 = vcmask 130048  }
  0x15   :  { %v1131_v4 = vshrl.u32 %v50_v0, 7  ;;  %v937_v9 = vpack.c.bf16 %v166_v7, %v165_v6  ;;  %v168_v10 = vld [vmem:[#allocation2 + $0x18] sm:$0xff]  ;;  %v1155_v21 = vld [vmem:[%s1351_s1 + $0x8] sm:$0xff]  ;;  %v1160_v22 = vld [vmem:[%s1351_s1 + $0x10] sm:$0xff]  ;;  %vm585_vm11 = vcmask 1041409   ;;  %vm587_vm12 = vcmask 1042434  }
  0x16   :  { %v55_v5 = vunpack.c.0.s8 %v54_v3  ;;  %v1136_v11 = vld [vmem:[%s1351_s1] sm:$0xff]  ;;  %v941_v13 = vpack.c.bf16 %v168_v10, %v167_v8  ;;  %v1170_v32 = vld [vmem:[%s1351_s1 + $0x18] sm:$0xff]  ;;  %v1192_v47 = vld [vmem:[%s1351_s1 + $0x28] sm:$0xff]  ;;  %vm589_vm13 = vcmask 1043459   ;;  %vm591_vm14 = vcmask 1044484   ;;  %s1077_s18 = smov [#allocation5]  }
  0x17   :  { %914 = vmatprep.mubr.msk.f32.mxu0 %vm176_vm0, %v1136_v11  ;;  %938 = vmatprep.subr.bf16.mxu0 %v937_v9  ;;  %v1144_v14 = vld [vmem:[%s1350_s0] sm:$0xff]  ;;  %v1150_v19 = vsub.s32 0, %v1131_v4  ;;  %v1201_v51 = vld [vmem:[%s1351_s1 + $0x30] sm:$0xff]  ;;  %v1217_v60 = vld [vmem:[%s1351_s1 + $0x38] sm:$0xff]  ;;  %vm593_vm15 = vcmask 1045509   ;;  %s843_s19 = sshll.u32 %s1077_s18, 4  ;;  %s844_s19 = int_to_ptr.vmem [resolvable:$true] %s843_s19 }
  0x18   :  { %v58_v12 = vsub.s32 %v55_v5, %v1131_v4  ;;  %940 = vmatpush3.bf16.msra.mxu0 %v937_v9  ;;  %v52_v16 = vcombine.high %v1144_v14, %v1144_v14  ;;  %v1175_v36 = vld [vmem:[%s1351_s1 + $0x20] sm:$0xff]  ;;  %s1042_s0 = scalar_lea.vmem %s844_s19, 128  ;;  %p1047_p9 = scmp.lt.s32.totalorder %s844_s19, %s844_s19 }
  0x19   :  { %942 = vmatprep.subr.bf16.mxu0 %v941_v13  ;;  %v868_v3 = vld [vmem:[%s1353_s3] ss:$0 sm:$0xff]  ;;  %s1074_s3 = smov 112   ;;  %p1043_p8 = scmp.ne.s32.totalorder %s844_s19, %s1042_s0 }
  0x1a   :  { %v59_v15 = vrot.slane %v1144_v14, %v58_v12  ;;  %v66_v20 = vrot.slane %v52_v16, %v58_v12  ;;  %p1048_p10 = scmp.lt.s32.totalorder %s1042_s0, %s1042_s0 }
  0x1c   :  { %v67_v17 = vcombine.high %v59_v15, %v59_v15  ;;  %v75_v18 = vrot.slane %v59_v15, %v58_v12  ;;  %944 = vmatpush3.bf16.msra.mxu0 %v941_v13  ;;  %v68_v26 = vcombine.high %v66_v20, %v66_v20  ;;  %v82_v27 = vrot.slane %v66_v20, %v58_v12  ;;  %p1049_p11 = por %p1048_p10, %p1047_p9 }
  0x1e   :  { %v89_v23 = vrot.slane %v67_v17, %v58_v12  ;;  %v852_v24 = vadd.s32 4294967295, %v75_v18  ;;  %v97_v25 = vcombine.high %v75_v18, %v75_v18  ;;  %v96_v33 = vrot.slane %v68_v26, %v58_v12  ;;  %p1050_p12 = pnand %p1049_p11, %p1043_p8 }
  0x1f   :  { %915 = vmatmul.mubr.msk.f32.vlgmr.msra.gmra.mrb[0].mxu0 %vm176_vm0, %v1155_v21  ;;  %v856_v34 = vadd.s32 4294967295, %v82_v27  ;;  %v98_v35 = vcombine.high %v82_v27, %v82_v27 }
  0x20   :  { %v853_v28 = vadd.s32 4294967295, %v89_v23  ;;  %v112_v29 = vrot.slane %v852_v24, %v1150_v19  ;;  %v99_v30 = vcombine.high %v89_v23, %v89_v23  ;;  %v854_v31 = vadd.s32 4294967295, %v97_v25  ;;  %917 = vmatprep.mubr.msk.f32.mxu0 %vm176_vm0, %v1160_v22 }
  0x21   :  { %v857_v42 = vadd.s32 4294967295, %v96_v33  ;;  %v128_v43 = vrot.slane %v856_v34, %v1150_v19  ;;  %v100_v44 = vcombine.high %v96_v33, %v96_v33  ;;  %v858_v46 = vadd.s32 4294967295, %v98_v35 }
  0x22   :  { %v116_v37 = vrot.slane %v853_v28, %v1150_v19  ;;  %vm141_vm1 = vcmp.eq.s32.totalorder %v1131_v4, %v112_v29  ;;  %v855_v38 = vadd.s32 4294967295, %v99_v30  ;;  %v120_v39 = vrot.slane %v854_v31, %v1150_v19 }
  0x23   :  { %v860_v41 = vsel %vm141_vm1, 1.0, %v1073_v40  ;;  %918 = vmatmul.mubr.msk.f32.gmra.mrb[2].mxu0 %vm176_vm0, %v1170_v32  ;;  %v132_v50 = vrot.slane %v857_v42, %v1150_v19  ;;  %vm145_vm4 = vcmp.eq.s32.totalorder %v1131_v4, %v128_v43  ;;  %v859_v54 = vadd.s32 4294967295, %v100_v44 }
  0x24   :  { %vm142_vm2 = vcmp.eq.s32.totalorder %v1131_v4, %v116_v37  ;;  %v124_v45 = vrot.slane %v855_v38, %v1150_v19  ;;  %vm143_vm3 = vcmp.eq.s32.totalorder %v1131_v4, %v120_v39  ;;  %920 = vmatprep.mubr.msk.f32.mxu0 %vm176_vm0, %v1175_v36  ;;  %v864_v53 = vsel %vm145_vm4, 1.0, %v1073_v40 }
  0x25   :  { %v861_v48 = vsel %vm142_vm2, 1.0, %v1073_v40  ;;  %v862_v49 = vsel %vm143_vm3, 1.0, %v1073_v40  ;;  %vm146_vm6 = vcmp.eq.s32.totalorder %v1131_v4, %v132_v50  ;;  %v136_v56 = vrot.slane %v858_v46, %v1150_v19 }
  0x26   :  { %v962_v52 = vpack.i.bf16 %v861_v48, %v860_v41  ;;  %vm144_vm5 = vcmp.eq.s32.totalorder %v1131_v4, %v124_v45  ;;  %v865_v58 = vsel %vm146_vm6, 1.0, %v1073_v40  ;;  %v140_v59 = vrot.slane %v859_v54, %v1150_v19 }
  0x27   :  { %v863_v55 = vsel %vm144_vm5, 1.0, %v1073_v40  ;;  %921 = vmatmul.mubr.msk.f32.gmra.mrb[4].mxu0 %vm176_vm0, %v1192_v47  ;;  %v973_v61 = vpack.i.bf16 %v865_v58, %v864_v53  ;;  %vm147_vm7 = vcmp.eq.s32.totalorder %v1131_v4, %v136_v56  ;;  %vm595_vm1 = vcmask 1046534  }
  0x28   :  { %963 = vperm.xlu0 %961, %v962_v52   ;;  %v967_v57 = vpack.i.bf16 %v863_v55, %v862_v49  ;;  %923 = vmatprep.mubr.msk.f32.mxu0 %vm176_vm0, %v1201_v51  ;;  %vm148_vm8 = vcmp.eq.s32.totalorder %v1131_v4, %v140_v59  ;;  %v866_v62 = vsel %vm147_vm7, 1.0, %v1073_v40  ;;  %vm597_vm2 = vcmask 1047559  }
  0x29   :  { %974 = vperm.xlu1 %972, %v973_v61   ;;  %v867_v63 = vsel %vm148_vm8, 1.0, %v1073_v40  ;;  %vm601_vm3 = vcmask 64512   ;;  %vm1076_vm5 = vmmov 0   ;;  %vm835_vm6 = vcmask 195584  }
  0x2a   :  { %v978_v1 = vpack.i.bf16 %v867_v63, %v866_v62  ;;  %934 = vmatprep.mubr.msk.f32.mxu1 %vm1076_vm5, %v1073_v40 }
  0x2b   :  { %924 = vmatmul.mubr.msk.f32.gmra.mrb[6].mxu0 %vm176_vm0, %v1217_v60 }
  0x2c   :  { %968 = vperm.xlu0 %961, %v967_v57  }
  0x2d   :  { %979 = vperm.xlu1 %972, %v978_v1  }
  0xa7   :  { %v964_v2 = vpop.permute.xlu0 %963 }
  0xa8   :  { %v966_v5 = vunpack.i.h.bf16 %v964_v2  ;;  %v965_v6 = vunpack.i.l.bf16 %v964_v2  ;;  %v975_v13 = vpop.permute.xlu1 %974 }
  0xa9   :  { %v977_v31 = vunpack.i.h.bf16 %v975_v13  ;;  %v976_v35 = vunpack.i.l.bf16 %v975_v13 }
  0xab   :  { %v969_v10 = vpop.permute.xlu0 %968 }
  0xac   :  { %v971_v20 = vunpack.i.h.bf16 %v969_v10  ;;  %v970_v26 = vunpack.i.l.bf16 %v969_v10  ;;  %v980_v38 = vpop.permute.xlu1 %979 }
  0xad   :  { %v982_v53 = vunpack.i.h.bf16 %v980_v38  ;;  %v981_v56 = vunpack.i.l.bf16 %v980_v38 }
  0xf2   :  { %v916_v7 = vpop.f32.mrb[0].mxu0 }
  0xf3   :  { %v1228_v8 = vadd.f32 %v916_v7, %v868_v3  ;;  %v267_v9 = vpop.f32.mrb[1].mxu0 }
  0xf4   :  { %v1230_v12 = vadd.f32 %v868_v3, %v267_v9 }
  0xf5   :  { %v347_v15 = vmul.f32 %v966_v5, %v1228_v8 }
  0xf6   :  { %v346_v16 = vmul.f32 %v965_v6, %v1230_v12  ;;  %v919_v17 = vpop.f32.mrb[2].mxu0 }
  0xf7   :  { %v362_v18 = vsel %vm354_vm9, %v347_v15, 0.0  ;;  %v1235_v23 = vadd.f32 %v919_v17, %v868_v3  ;;  %v277_v24 = vpop.f32.mrb[3].mxu0 }
  0xf8   :  { %v363_v25 = vrot.slane %v362_v18, 4  ;;  %v355_v27 = vsel %vm354_vm9, %v346_v16, 0.0  ;;  %v1238_v28 = vadd.f32 %v868_v3, %v277_v24 }
  0xf9   :  { %v356_v29 = vrot.slane %v355_v27, 4  ;;  %v349_v30 = vmul.f32 %v971_v20, %v1235_v23 }
  0xfa   :  { %v364_v33 = vadd.f32 %v363_v25, %v362_v18  ;;  %v348_v34 = vmul.f32 %v970_v26, %v1238_v28  ;;  %v922_v37 = vpop.f32.mrb[4].mxu0 }
  0xfb   :  { %v357_v39 = vadd.f32 %v356_v29, %v355_v27  ;;  %v376_v41 = vsel %vm354_vm9, %v349_v30, 0.0  ;;  %v1243_v42 = vadd.f32 %v922_v37, %v868_v3  ;;  %v287_v43 = vpop.f32.mrb[5].mxu0 }
  0xfc   :  { %v365_v44 = vrot.slane %v364_v33, 2  ;;  %v377_v45 = vrot.slane %v376_v41, 4  ;;  %v369_v46 = vsel %vm354_vm9, %v348_v34, 0.0  ;;  %v1246_v48 = vadd.f32 %v868_v3, %v287_v43 }
  0xfd   :  { %v358_v49 = vrot.slane %v357_v39, 2  ;;  %v370_v50 = vrot.slane %v369_v46, 4  ;;  %v351_v52 = vmul.f32 %v977_v31, %v1243_v42 }
  0xfe   :  { %v378_v54 = vadd.f32 %v377_v45, %v376_v41  ;;  %v350_v55 = vmul.f32 %v976_v35, %v1246_v48  ;;  %v925_v57 = vpop.f32.mrb[6].mxu0  ;;  %v366_v58 = vadd.f32 %v365_v44, %v364_v33 }
  0xff   :  { %v371_v59 = vadd.f32 %v370_v50, %v369_v46  ;;  %v390_v61 = vsel %vm354_vm9, %v351_v52, 0.0  ;;  %v1251_v62 = vadd.f32 %v925_v57, %v868_v3  ;;  %v297_v63 = vpop.f32.mrb[7].mxu0  ;;  %v359_v1 = vadd.f32 %v358_v49, %v357_v39 }
 0x100   :  { %v379_v2 = vrot.slane %v378_v54, 2  ;;  %v391_v5 = vrot.slane %v390_v61, 4  ;;  %v383_v6 = vsel %vm354_vm9, %v350_v55, 0.0  ;;  %v1254_v7 = vadd.f32 %v868_v3, %v297_v63 }
 0x101   :  { %v372_v9 = vrot.slane %v371_v59, 2  ;;  %v384_v10 = vrot.slane %v383_v6, 4  ;;  %v353_v13 = vmul.f32 %v982_v53, %v1251_v62  ;;  %v367_v15 = vrot.slane %v366_v58, 1 }
 0x102   :  { %v392_v16 = vadd.f32 %v391_v5, %v390_v61  ;;  %v352_v17 = vmul.f32 %v981_v56, %v1254_v7  ;;  %v360_v18 = vrot.slane %v359_v1, 1  ;;  %v380_v20 = vadd.f32 %v379_v2, %v378_v54 }
 0x103   :  { %v385_v24 = vadd.f32 %v384_v10, %v383_v6  ;;  %v404_v25 = vsel %vm354_vm9, %v353_v13, 0.0  ;;  %v368_v26 = vadd.f32 %v367_v15, %v366_v58  ;;  %v373_v27 = vadd.f32 %v372_v9, %v371_v59 }
 0x104   :  { %v393_v29 = vrot.slane %v392_v16, 2  ;;  %v405_v30 = vrot.slane %v404_v25, 4  ;;  %v397_v3 = vsel %vm354_vm9, %v352_v17, 0.0  ;;  %v361_v31 = vadd.f32 %v360_v18, %v359_v1 }
 0x105   :  { %v386_v33 = vrot.slane %v385_v24, 2  ;;  %v398_v34 = vrot.slane %v397_v3, 4  ;;  %421 = vrot.lane.b32.xlu1 %v368_v26, %s1074_s3  ;;  %v381_v35 = vrot.slane %v380_v20, 1  ;;  %v374_v37 = vrot.slane %v373_v27, 1 }
 0x106   :  { %v406_v38 = vadd.f32 %v405_v30, %v404_v25  ;;  %419 = vrot.lane.b32.xlu0 %v361_v31, %s1074_s3  ;;  %v394_v39 = vadd.f32 %v393_v29, %v392_v16 }
 0x107   :  { %v399_v41 = vadd.f32 %v398_v34, %v397_v3  ;;  %v382_v43 = vadd.f32 %v381_v35, %v380_v20  ;;  %v375_v44 = vadd.f32 %v374_v37, %v373_v27  ;;  %v387_v45 = vadd.f32 %v386_v33, %v385_v24 }
 0x108   :  { %v407_v46 = vrot.slane %v406_v38, 2  ;;  %v395_v49 = vrot.slane %v394_v39, 1 }
 0x109   :  { %v400_v50 = vrot.slane %v399_v41, 2  ;;  %425 = vrot.lane.b32.xlu1 %v382_v43, %s1074_s3  ;;  %v388_v52 = vrot.slane %v387_v45, 1  ;;  %v885_v43 = vld [vmem:[%s1354_s4] ss:$0 sm:$0xff] }
 0x10a   :  { %423 = vrot.lane.b32.xlu0 %v375_v44, %s1074_s3  ;;  %v396_v53 = vadd.f32 %v395_v49, %v394_v39  ;;  %v408_v54 = vadd.f32 %v407_v46, %v406_v38 }
 0x10b   :  { %v389_v55 = vadd.f32 %v388_v52, %v387_v45  ;;  %v401_v56 = vadd.f32 %v400_v50, %v399_v41 }
 0x10c   :  { %v409_v57 = vrot.slane %v408_v54, 1 }
 0x10d   :  { %429 = vrot.lane.b32.xlu1 %v396_v53, %s1074_s3  ;;  %v402_v58 = vrot.slane %v401_v56, 1 }
 0x10e   :  { %427 = vrot.lane.b32.xlu0 %v389_v55, %s1074_s3  ;;  %v410_v59 = vadd.f32 %v409_v57, %v408_v54 }
 0x10f   :  { %v403_v61 = vadd.f32 %v402_v58, %v401_v56 }
 0x111   :  { %433 = vrot.lane.b32.xlu1 %v410_v59, %s1074_s3 }
 0x112   :  { %431 = vrot.lane.b32.xlu0 %v403_v61, %s1074_s3 }
 0x177   :  { %v422_v63 = vpop.permute.xlu1 %421 }
 0x178   :  { %v444_v1 = vadd.f32 %v422_v63, %v1228_v8  ;;  %v420_v2 = vpop.permute.xlu0 %419 }
 0x179   :  { %v443_v5 = vadd.f32 %v420_v2, %v1230_v12 }
 0x17a   :  { %v878_v6 = vmul.f32 -1.442695, %v444_v1 }
 0x17b   :  { %v877_v9 = vmul.f32 -1.442695, %v443_v5  ;;  %v426_v10 = vpop.permute.xlu1 %425 }
 0x17c   :  { %984 = vpow2.f32 %v878_v6  ;;  %v446_v13 = vadd.f32 %v426_v10, %v1235_v23  ;;  %v424_v15 = vpop.permute.xlu0 %423 }
 0x17d   :  { %986 = vpow2.f32 %v877_v9  ;;  %v445_v16 = vadd.f32 %v424_v15, %v1238_v28 }
 0x17e   :  { %v880_v17 = vmul.f32 -1.442695, %v446_v13 }
 0x17f   :  { %v879_v18 = vmul.f32 -1.442695, %v445_v16  ;;  %v430_v20 = vpop.permute.xlu1 %429 }
 0x180   :  { %988 = vpow2.f32 %v880_v17  ;;  %v448_v24 = vadd.f32 %v430_v20, %v1243_v42  ;;  %v428_v8 = vpop.permute.xlu0 %427 }
 0x181   :  { %990 = vpow2.f32 %v879_v18  ;;  %v447_v12 = vadd.f32 %v428_v8, %v1246_v48  ;;  %v540_v8 = vand.u32 127, %v50_v0 }
 0x182   :  { %v882_v25 = vmul.f32 -1.442695, %v448_v24 }
 0x183   :  { %v881_v26 = vmul.f32 -1.442695, %v447_v12  ;;  %v434_v27 = vpop.permute.xlu1 %433 }
 0x184   :  { %992 = vpow2.f32 %v882_v25  ;;  %v450_v23 = vadd.f32 %v434_v27, %v1251_v62  ;;  %v432_v29 = vpop.permute.xlu0 %431  ;;  %v555_v25 = vsub.s32 %v540_v8, %v1131_v4 }
 0x185   :  { %994 = vpow2.f32 %v881_v26  ;;  %v449_v28 = vadd.f32 %v432_v29, %v1254_v7 }
 0x186   :  { %v985_v30 = vpop.eup %984  ;;  %v884_v3 = vmul.f32 -1.442695, %v450_v23 }
 0x187   :  { %v987_v31 = vpop.eup %986  ;;  %v476_v33 = vadd.f32 1.0, %v985_v30  ;;  %v883_v34 = vmul.f32 -1.442695, %v449_v28 }
 0x188   :  { %v475_v42 = vadd.f32 1.0, %v987_v31  ;;  %996 = vpow2.f32 %v884_v3 }
 0x189   :  { %998 = vrcp.f32 %v476_v33 }
 0x18a   :  { %v989_v35 = vpop.eup %988  ;;  %1000 = vrcp.f32 %v475_v42 }
 0x18b   :  { %v991_v48 = vpop.eup %990  ;;  %v478_v37 = vadd.f32 1.0, %v989_v35  ;;  %1002 = vpow2.f32 %v883_v34 }
 0x18c   :  { %v477_v38 = vadd.f32 1.0, %v991_v48 }
 0x18d   :  { %1004 = vrcp.f32 %v478_v37 }
 0x18e   :  { %v993_v62 = vpop.eup %992  ;;  %1006 = vrcp.f32 %v477_v38 }
 0x18f   :  { %v995_v39 = vpop.eup %994  ;;  %v480_v41 = vadd.f32 1.0, %v993_v62 }
 0x190   :  { %v479_v7 = vadd.f32 1.0, %v995_v39 }
 0x191   :  { %1008 = vrcp.f32 %v480_v41 }
 0x192   :  { %v997_v44 = vpop.eup %996  ;;  %1010 = vrcp.f32 %v479_v7 }
 0x193   :  { %v999_v45 = vpop.eup %998  ;;  %v482_v46 = vadd.f32 1.0, %v997_v44 }
 0x194   :  { %v1001_v49 = vpop.eup %1000  ;;  %v507_v50 = vmul.f32 %v999_v45, %v885_v43 }
 0x195   :  { %v1003_v52 = vpop.eup %1002  ;;  %v506_v53 = vmul.f32 %v1001_v49, %v885_v43  ;;  %1012 = vrcp.f32 %v482_v46 }
 0x196   :  { %v481_v54 = vadd.f32 1.0, %v1003_v52  ;;  %v518_v55 = vsel %vm514_vm10, %v507_v50, 0.0 }
 0x197   :  { %v1005_v56 = vpop.eup %1004  ;;  %519 = vadd.xlane.f32.xlu1 %v518_v55  ;;  %v515_v57 = vsel %vm514_vm10, %v506_v53, 0.0 }
 0x198   :  { %v1007_v58 = vpop.eup %1006  ;;  %1014 = vrcp.f32 %v481_v54  ;;  %516 = vadd.xlane.f32.xlu0 %v515_v57  ;;  %v509_v59 = vmul.f32 %v1005_v56, %v885_v43 }
 0x199   :  { %v508_v1 = vmul.f32 %v1007_v58, %v885_v43 }
 0x19a   :  { %v524_v61 = vsel %vm514_vm10, %v509_v59, 0.0  ;;  %v626_v59 = vsub.s32 1, %v1131_v4 }
 0x19b   :  { %v1009_v63 = vpop.eup %1008  ;;  %v521_v6 = vsel %vm514_vm10, %v508_v1, 0.0 }
 0x19c   :  { %v1011_v2 = vpop.eup %1010  ;;  %525 = vadd.xlane.f32.xlu0 %v524_v61  ;;  %v511_v10 = vmul.f32 %v1009_v63, %v885_v43 }
 0x19d   :  { %v510_v5 = vmul.f32 %v1011_v2, %v885_v43 }
 0x19e   :  { %v530_v16 = vsel %vm514_vm10, %v511_v10, 0.0 }
 0x19f   :  { %v527_v9 = vsel %vm514_vm10, %v510_v5, 0.0  ;;  %v1013_v13 = vpop.eup %1012  ;;  %v633_v5 = vsub.s32 2, %v1131_v4 }
 0x1a0   :  { %522 = vadd.xlane.f32.xlu0 %v521_v6  ;;  %528 = vadd.xlane.f32.xlu1 %v527_v9  ;;  %v513_v18 = vmul.f32 %v1013_v13, %v885_v43  ;;  %v654_v6 = vsub.s32 5, %v1131_v4  ;;  %v640_v13 = vsub.s32 3, %v1131_v4 }
 0x1a2   :  { %v1015_v15 = vpop.eup %1014  ;;  %v536_v24 = vsel %vm514_vm10, %v513_v18, 0.0  ;;  %v647_v18 = vsub.s32 4, %v1131_v4 }
 0x1a3   :  { %v512_v17 = vmul.f32 %v1015_v15, %v885_v43  ;;  %v668_v15 = vsub.s32 7, %v1131_v4 }
 0x1a4   :  { %531 = vadd.xlane.f32.xlu0 %v530_v16 }
 0x1a5   :  { %v533_v20 = vsel %vm514_vm10, %v512_v17, 0.0 }
 0x1a6   :  { %534 = vadd.xlane.f32.xlu1 %v533_v20  ;;  %v661_v20 = vsub.s32 6, %v1131_v4  ;;  %v739_v4 = vld [vmem:[%s1355_s5 + $0x10] sm:$0xff] }
 0x1a8   :  { %537 = vadd.xlane.f32.xlu0 %v536_v24  ;;  %v737_v24 = vld [vmem:[%s1355_s5] sm:$0xff] }
 0x1b7   :  { %542 = vperm.xlu1 %972, %v1144_v14  }
 0x224   :  { %v520_v26 = vpop.xlane.xlu1 %519 }
 0x225   :  { %v517_v12 = vpop.xlane.xlu0 %516  ;;  %v560_v23 = vrot.slane %v520_v26, %v555_v25  ;;  %v1075_v26 = vmov 0.0|0.0  }
 0x226   :  { %v556_v29 = vrot.slane %v517_v12, %v555_v25  ;;  %945 = vmatprep.subr.bf16.mxu1 %v1075_v26 }
 0x228   :  { %v586_v31 = vsel %vm585_vm11, %v560_v23, %v556_v29 }
 0x229   :  { %v526_v27 = vpop.xlane.xlu0 %525 }
 0x22a   :  { %v568_v33 = vrot.slane %v526_v27, %v555_v25  ;;  %v740_v27 = vld [vmem:[%s1355_s5 + $0x18] sm:$0xff] }
 0x22b   :  { %v949_v23 = vpack.c.bf16 %v740_v27, %v739_v4 }
 0x22d   :  { %v529_v28 = vpop.xlane.xlu1 %528  ;;  %v523_v30 = vpop.xlane.xlu0 %522 }
 0x22e   :  { %v564_v3 = vrot.slane %v523_v30, %v555_v25  ;;  %v572_v14 = vrot.slane %v529_v28, %v555_v25 }
 0x230   :  { %v588_v0 = vsel %vm587_vm12, %v564_v3, %v586_v31 }
 0x231   :  { %v590_v34 = vsel %vm589_vm13, %v568_v33, %v588_v0  ;;  %v532_v42 = vpop.xlane.xlu0 %531 }
 0x232   :  { %v592_v35 = vsel %vm591_vm14, %v572_v14, %v590_v34  ;;  %v576_v48 = vrot.slane %v532_v42, %v555_v25 }
 0x233   :  { %v535_v37 = vpop.xlane.xlu1 %534 }
 0x234   :  { %v580_v38 = vrot.slane %v535_v37, %v555_v25  ;;  %v594_v62 = vsel %vm593_vm15, %v576_v48, %v592_v35 }
 0x235   :  { %v538_v39 = vpop.xlane.xlu0 %537 }
 0x236   :  { %v584_v41 = vrot.slane %v538_v39, %v555_v25  ;;  %v596_v43 = vsel %vm595_vm1, %v580_v38, %v594_v62 }
 0x237   :  { %v543_v7 = vpop.permute.xlu1 %542 }
 0x238   :  { %vm544_vm4 = vcmp.lt.s32.totalorder %v540_v8, %v543_v7  ;;  %v598_v44 = vsel %vm597_vm2, %v584_v41, %v596_v43  ;;  %v738_v8 = vld [vmem:[%s1355_s5 + $0x8] sm:$0xff] }
 0x239   :  { %v600_v45 = vsel %vm544_vm4, %v598_v44, -1e+30  ;;  %v886_v54 = vsel %vm544_vm4, 1.0, %v1073_v40  ;;  %v946_v12 = vpack.c.bf16 %v738_v8, %v737_v24 }
 0x23a   :  { %v602_v46 = vsel %vm601_vm3, %v600_v45, -inf }
 0x23b   :  { %603 = vmax.xlane.f32.xlu0 %v602_v46  ;;  %947 = vmatpush3.bf16.msra.mxu1 %v946_v12 }
 0x23c   :  { %948 = vmatprep.subr.bf16.mxu1 %v1075_v26 }
 0x23f   :  { %950 = vmatpush3.bf16.msra.mxu1 %v949_v23 }
 0x2c8   :  { %v604_v49 = vpop.xlane.xlu0 %603 }
 0x2c9   :  { %v605_v50 = vsub.f32 %v600_v45, %v604_v49 }
 0x2cb   :  { %v606_v52 = vmul.f32 1.442695, %v605_v50 }
 0x2cd   :  { %1016 = vpow2.f32 %v606_v52 }
 0x2d7   :  { %v1017_v53 = vpop.eup %1016 }
 0x2d8   :  { %v610_v55 = vmul.f32 %v1017_v53, %v886_v54 }
 0x2da   :  { %v611_v56 = vsel %vm601_vm3, %v610_v55, 0.0 }
 0x2db   :  { %612 = vadd.xlane.f32.xlu0 %v611_v56 }
 0x368   :  { %v613_v57 = vpop.xlane.xlu0 %612 }
 0x369   :  { %v614_v58 = vmax.f32 %v613_v57, 1e-30 }
 0x36b   :  { %1018 = vrcp.f32 %v614_v58 }
 0x375   :  { %v1019_v61 = vpop.eup %1018 }
 0x376   :  { %v616_v63 = vmul.f32 %v1019_v61, %v610_v55 }
 0x378   :  { %v627_v1 = vrot.slane %v616_v63, %v626_v59  ;;  %v620_v2 = vrot.slane %v616_v63, %v1150_v19  ;;  %v634_v9 = vrot.slane %v616_v63, %v633_v5  ;;  %v655_v10 = vrot.slane %v616_v63, %v654_v6 }
 0x379   :  { %v641_v16 = vrot.slane %v616_v63, %v640_v13  ;;  %v669_v17 = vrot.slane %v616_v63, %v668_v15  ;;  %v648_v19 = vrot.slane %v616_v63, %v647_v18  ;;  %v662_v25 = vrot.slane %v616_v63, %v661_v20 }
 0x37a   :  { %629 = vbcast.lane.b32.xlu1 %v627_v1, 256  ;;  %622 = vbcast.lane.b32.xlu0 %v620_v2, 256 }
 0x37e   :  { %636 = vbcast.lane.b32.xlu1 %v634_v9, 256  ;;  %657 = vbcast.lane.b32.xlu0 %v655_v10, 256 }
 0x382   :  { %643 = vbcast.lane.b32.xlu1 %v641_v16, 256  ;;  %671 = vbcast.lane.b32.xlu0 %v669_v17, 256 }
 0x386   :  { %650 = vbcast.lane.b32.xlu1 %v648_v19, 256 }
 0x38a   :  { %664 = vbcast.lane.b32.xlu1 %v662_v25, 256 }
 0x3ec   :  { %v630_v29 = vpop.permute.xlu1 %629  ;;  %v623_v28 = vpop.permute.xlu0 %622 }
 0x3ed   :  { %v674_v30 = vmul.f32 %v630_v29, %v1155_v21  ;;  %v673_v3 = vmul.f32 %v623_v28, %v1136_v11 }
 0x3ef   :  { %v688_v31 = vsel %vm176_vm0, %v674_v30, 0.0  ;;  %v681_v33 = vsel %vm176_vm0, %v673_v3, 0.0 }
 0x3f0   :  { %v689_v14 = vrot.slane %v688_v31, 4  ;;  %v682_v0 = vrot.slane %v681_v33, 4  ;;  %v637_v34 = vpop.permute.xlu1 %636  ;;  %v658_v42 = vpop.permute.xlu0 %657 }
 0x3f1   :  { %v675_v35 = vmul.f32 %v637_v34, %v1160_v22  ;;  %v678_v48 = vmul.f32 %v658_v42, %v1192_v47 }
 0x3f2   :  { %v690_v40 = vadd.f32 %v689_v14, %v688_v31  ;;  %v683_v37 = vadd.f32 %v682_v0, %v681_v33 }
 0x3f3   :  { %v695_v38 = vsel %vm176_vm0, %v675_v35, 0.0  ;;  %v716_v21 = vsel %vm176_vm0, %v678_v48, 0.0 }
 0x3f4   :  { %v691_v62 = vrot.slane %v690_v40, 2  ;;  %v684_v11 = vrot.slane %v683_v37, 2  ;;  %v696_v39 = vrot.slane %v695_v38, 4  ;;  %v644_v41 = vpop.permute.xlu1 %643  ;;  %v672_v7 = vpop.permute.xlu0 %671  ;;  %v717_v43 = vrot.slane %v716_v21, 4 }
 0x3f5   :  { %v676_v44 = vmul.f32 %v644_v41, %v1170_v32  ;;  %v680_v45 = vmul.f32 %v672_v7, %v1217_v60 }
 0x3f6   :  { %v697_v46 = vadd.f32 %v696_v39, %v695_v38  ;;  %v692_v49 = vadd.f32 %v691_v62, %v690_v40  ;;  %v685_v50 = vadd.f32 %v684_v11, %v683_v37  ;;  %v718_v54 = vadd.f32 %v717_v43, %v716_v21  ;;  %v887_v21 = vld [vmem:[%s1356_s6] ss:$0 sm:$0xff] }
 0x3f7   :  { %v702_v22 = vsel %vm176_vm0, %v676_v44, 0.0  ;;  %v730_v47 = vsel %vm176_vm0, %v680_v45, 0.0 }
 0x3f8   :  { %v698_v52 = vrot.slane %v697_v46, 2  ;;  %v651_v53 = vpop.permute.xlu1 %650  ;;  %v703_v55 = vrot.slane %v702_v22, 4  ;;  %v731_v56 = vrot.slane %v730_v47, 4  ;;  %v693_v60 = vrot.slane %v692_v49, 1 }
 0x3f9   :  { %v677_v57 = vmul.f32 %v651_v53, %v1175_v36  ;;  %v686_v2 = vrot.slane %v685_v50, 1  ;;  %v719_v5 = vrot.slane %v718_v54, 2 }
 0x3fa   :  { %v699_v58 = vadd.f32 %v698_v52, %v697_v46  ;;  %v704_v59 = vadd.f32 %v703_v55, %v702_v22  ;;  %v732_v61 = vadd.f32 %v731_v56, %v730_v47  ;;  %v694_v19 = vadd.f32 %v693_v60, %v692_v49 }
 0x3fb   :  { %v709_v32 = vsel %vm176_vm0, %v677_v57, 0.0  ;;  %v687_v20 = vadd.f32 %v686_v2, %v685_v50  ;;  %v720_v24 = vadd.f32 %v719_v5, %v718_v54 }
 0x3fc   :  { %v710_v63 = vrot.slane %v709_v32, 4  ;;  %v665_v1 = vpop.permute.xlu1 %664  ;;  %v705_v6 = vrot.slane %v704_v59, 2  ;;  %v700_v10 = vrot.slane %v699_v58, 1  ;;  %v733_v16 = vrot.slane %v732_v61, 2 }
 0x3fd   :  { %v679_v9 = vmul.f32 %v665_v1, %v1201_v51  ;;  %v756_v51 = vsel %vm585_vm11, %v694_v19, %v687_v20  ;;  %v721_v28 = vrot.slane %v720_v24, 1 }
 0x3fe   :  { %v711_v13 = vadd.f32 %v710_v63, %v709_v32  ;;  %v706_v15 = vadd.f32 %v705_v6, %v704_v59  ;;  %v701_v12 = vadd.f32 %v700_v10, %v699_v58  ;;  %v734_v27 = vadd.f32 %v733_v16, %v732_v61 }
 0x3ff   :  { %v723_v17 = vsel %vm176_vm0, %v679_v9, 0.0  ;;  %v722_v42 = vadd.f32 %v721_v28, %v720_v24 }
 0x400   :  { %v712_v36 = vrot.slane %v711_v13, 2  ;;  %v724_v18 = vrot.slane %v723_v17, 4  ;;  %v707_v8 = vrot.slane %v706_v15, 1  ;;  %v757_v30 = vsel %vm587_vm12, %v701_v12, %v756_v51 }
 0x401   :  { %v735_v14 = vrot.slane %v734_v27, 1 }
 0x402   :  { %v713_v25 = vadd.f32 %v712_v36, %v711_v13  ;;  %v725_v26 = vadd.f32 %v724_v18, %v723_v17  ;;  %v708_v4 = vadd.f32 %v707_v8, %v706_v15 }
 0x403   :  { %v736_v48 = vadd.f32 %v735_v14, %v734_v27 }
 0x404   :  { %v714_v23 = vrot.slane %v713_v25, 1  ;;  %v726_v29 = vrot.slane %v725_v26, 2  ;;  %v758_v33 = vsel %vm589_vm13, %v708_v4, %v757_v30 }
 0x406   :  { %v715_v3 = vadd.f32 %v714_v23, %v713_v25  ;;  %v727_v31 = vadd.f32 %v726_v29, %v725_v26 }
 0x408   :  { %v728_v0 = vrot.slane %v727_v31, 1  ;;  %v759_v34 = vsel %vm591_vm14, %v715_v3, %v758_v33 }
 0x409   :  { %v760_v40 = vsel %vm593_vm15, %v722_v42, %v759_v34 }
 0x40a   :  { %v729_v35 = vadd.f32 %v728_v0, %v727_v31 }
 0x40c   :  { %v761_v37 = vsel %vm595_vm1, %v729_v35, %v760_v40 }
 0x40d   :  { %v762_v38 = vsel %vm597_vm2, %v736_v48, %v761_v37 }
 0x40e   :  { %935 = vmatmul.mubr.msk.f32.vlgmr.msra.gmra.mrb[0].mxu1 %vm176_vm0, %v762_v38 }
 0x4e1   :  { %v831_v62 = vpop.f32.mrb[0].mxu1 }
 0x4e2   :  { %v832_v11 = vadd.f32 %v887_v21, %v831_v62  ;;  %v936_v39 = vpop.f32.mrb[1].mxu1 }
 0x4e4   :  { %836 = vst.msk [vmem:[#allocation5] sm:$0xff] %vm835_vm6, %v832_v11 }
 0x4e5   :  { %1053 = shalt.err (!%p1050_p12)
}
 0x4e6   :  { %s1054_s22 = scalar_lea.hbm %s1357_s7, 128 }
 0x4e7   :  { %p1055_p13 = scmp.ne.s32.totalorder %s1357_s7, %s1054_s22  ;;  %p1058_p0 = scmp.lt.u32.totalorder %s1054_s22, %s1357_s7 }
 0x4e9   :  { %p1060_p1 = pnand %p1058_p0, %p1055_p13 }
 0x4eb   :  { %1063 = shalt.err (!%p1060_p1)
}
 0x4ec   :  { %846 = dma.vmem_to_hbm [thread:$0]  %s844_s19, 128, %s1357_s7, [#allocation4]  }
 0x4ed   :  { %1066 = dma.done.wait [#allocation4], 128  }
 0x4ee   :  { %1067 = vsyncadd [#allocation4], 4294967168 }
 0x4ef   :  { %850 = vsyncpa [#allocation3], 1 }
 0x4f0   :  { %851 = vsyncpa [#allocation4], 1 }

</bundles_post_ra>
